<compile_context>
chip_gen: v5e
topology: v5e:2x2
jax: 0.10.0
libtpu: 0.0.40
codegen_flags: <defaults>
</compile_context>

<pallas_src>
import functools

import jax
import jax.numpy as jnp
from jax import lax
from jax.experimental import pallas as pl
from jax.experimental.pallas import tpu as pltpu

# MXU operand dtype.  Set to jnp.bfloat16 for the real model (D=768, big
# episodes): ~2x MXU throughput on v5e/v6e/v7x; accumulation stays f32 via
# preferred_element_type.  Kept f32 here so the toy run matches the reference
# numerics exactly.  (Elementwise/exp/log math is always f32 — v5e VPU/EUP
# have no bf16 path.)
_MXU_DTYPE = jnp.float32

_VMEM = pl.BlockSpec(memory_space=pltpu.MemorySpace.VMEM)
_SMEM = pl.BlockSpec(memory_space=pltpu.MemorySpace.SMEM)


# ----------------------------------------------------------------------------
# Kernel 1: ContrastNet.mixup — vectorised partner selection + lerp
# ----------------------------------------------------------------------------
def _mixup_kernel(q_ref, z_ref, l_ref, mix_ref, *, block):
    """For each support row i (< half): argmax similarity over rows that are
    neither in i's own class-block of supports nor query rows, then emit
    l*z[i] + (1-l)*z[argmax]."""
    q = q_ref[...]                                   # [half, D] (= z[:half])
    z = z_ref[...]                                   # [N0,   D]
    half = q.shape[0]
    n0 = z.shape[0]
    lam = l_ref[0, 0]                                # scalar from SMEM

    # Raw dot similarity.  exp(x/5 - rowmax) is monotone -> argmax unchanged,
    # so skip the EUP exp and the XLU row-max of the reference entirely.
    m = lax.dot_general(q.astype(_MXU_DTYPE), z.astype(_MXU_DTYPE),
                        (((1,), (1,)), ((), ())),
                        preferred_element_type=jnp.float32)      # [half, N0]

    rid = lax.broadcasted_iota(jnp.int32, (half, n0), 0)
    cid = lax.broadcasted_iota(jnp.int32, (half, n0), 1)
    if block == 1:                       # 1-shot path (demo): no int division
        rb, cb = rid, cid
    else:
        rb, cb = rid // block, cid // block
    # Reference chain: zero own class-block (first 5 blocks only, n_class=5 is
    # hard-coded in the PyTorch code) and all query rows [half, N0).
    banned = ((rb == cb) & (rb < 5)) | (cid >= half)
    sm = jnp.where(banned, jnp.float32(-1e30), m)

    row_max = jnp.max(sm, axis=1, keepdims=True)                 # [half, 1]
    cid_f = cid.astype(jnp.float32)
    # first index attaining the row max (matches torch .max(0) tie-breaking)
    mix_idx = jnp.min(jnp.where(sm == row_max, cid_f, jnp.float32(n0)),
                      axis=1, keepdims=True)                     # [half, 1]
    onehot = (cid_f == mix_idx).astype(jnp.float32)              # [half, N0]
    # dynamic row gather z[mix_idx] as a tiny one-hot matmul (MXU, lowers clean)
    partner = lax.dot_general(onehot.astype(_MXU_DTYPE), z.astype(_MXU_DTYPE),
                              (((1,), (0,)), ((), ())),
                              preferred_element_type=jnp.float32)  # [half, D]

    mix_ref[...] = lam * q + (1.0 - lam) * partner


def mixup(z, l):
    """ContrastNet.mixup(z, l, z_proto) — z_proto is unused by the reference."""
    n0, d = z.shape
    half = n0 // 2
    block = max(n0 // 10, 1)
    z = z.astype(jnp.float32)
    l_arr = jnp.asarray(l, jnp.float32).reshape(1, 1)
    return pl.pallas_call(
        functools.partial(_mixup_kernel, block=block),
        out_shape=jax.ShapeDtypeStruct((half, d), jnp.float32),
        in_specs=[_VMEM, _VMEM, _SMEM],
        out_specs=_VMEM,
    )(z[:half], z, l_arr)


# ----------------------------------------------------------------------------
# Kernel 2: full Contrastive_Loss.forward
# ----------------------------------------------------------------------------
def _contrastive_loss_kernel(x_ref, lab_col_ref, lab_row_ref, o_ref, *,
                             tau, exclude_diag):
    """PyTorch reference (r = -log(s_j/s_i) is a length-N vector indexed by j,
    broadcast over ROWS of mask_j):
        log_p[i] = sum_j mask_j[i,j] * r[j] / pos_num[i];  loss = mean_i log_p[i]
    mask_j is symmetric (same-label mask * symmetric mask_i), hence
        sum_i log_p[i] = sum_{i,j} mask_j[i,j] * r[i] / pos_num[j]
    which needs only a lane-broadcast r ([N,1]) and a column-sum pos ([1,N]):
    no transpose and no 1-lane-wide MXU matmul."""
    x = x_ref[...]                                               # [N, D]
    n = x.shape[0]

    m = lax.dot_general(x.astype(_MXU_DTYPE), x.astype(_MXU_DTYPE),
                        (((1,), (1,)), ((), ())),
                        preferred_element_type=jnp.float32) * (1.0 / tau)
    s = jnp.exp(m - jnp.max(m, axis=1, keepdims=True))           # [N, N]

    if exclude_diag:                                             # len(x) > 1
        rid = lax.broadcasted_iota(jnp.int32, (n, n), 0)
        cid = lax.broadcasted_iota(jnp.int32, (n, n), 1)
        mask_i = jnp.where(rid == cid, 0.0, 1.0).astype(jnp.float32)
    else:
        mask_i = jnp.ones((n, n), jnp.float32)

    same = lab_col_ref[...] == lab_row_ref[...]                  # [N,1]==[1,N]
    mask_j = jnp.where(same, 1.0, 0.0).astype(jnp.float32) * mask_i

    s_i = jnp.maximum(jnp.sum(s * mask_i, axis=1, keepdims=True), 1e-10)
    s_j = jnp.maximum(jnp.sum(s * mask_j, axis=1, keepdims=True), 1e-10)
    r = -jnp.log(s_j / s_i)                                      # [N, 1]

    # column sums == row sums by symmetry; the floor at 1 only guards the
    # degenerate "no positive partner" row (where PyTorch would emit 0/0=NaN).
    pos = jnp.maximum(jnp.sum(mask_j, axis=0, keepdims=True), 1.0)   # [1, N]

    contrib = (mask_j * r) / pos                                 # VPU only
    row_tot = jnp.sum(contrib, axis=1, keepdims=True)            # [N, 1]
    o_ref[...] = jnp.sum(row_tot, axis=0, keepdims=True) * (1.0 / n)


def contrastive_loss(batch_label, x_list, mixup_rows, tau=1.0):
    X = jnp.concatenate(list(x_list) + [mixup_rows], axis=0).astype(jnp.float32)
    labels = jnp.concatenate([batch_label] * len(x_list) + [batch_label],
                             axis=0).astype(jnp.int32)
    n, _ = X.shape
    out = pl.pallas_call(
        functools.partial(_contrastive_loss_kernel, tau=float(tau),
                          exclude_diag=(len(x_list) != 1)),
        out_shape=jax.ShapeDtypeStruct((1, 1), jnp.float32),
        in_specs=[_VMEM, _VMEM, _VMEM],
        out_specs=_VMEM,
    )(X, labels.reshape(n, 1), labels.reshape(1, n))
    return out[0, 0]


# ----------------------------------------------------------------------------
# Kernel 3: pred_proto = dot_similarity + argmax (fused)
# ----------------------------------------------------------------------------
def _pred_proto_kernel(q_ref, p_ref, y_ref):
    q = q_ref[...]
    p = p_ref[...]
    s = lax.dot_general(q.astype(_MXU_DTYPE), p.astype(_MXU_DTYPE),
                        (((1,), (1,)), ((), ())),
                        preferred_element_type=jnp.float32)      # [nq, nc]
    nq, nc = s.shape
    cid_f = lax.broadcasted_iota(jnp.int32, (nq, nc), 1).astype(jnp.float32)
    row_max = jnp.max(s, axis=1, keepdims=True)
    idx = jnp.min(jnp.where(s == row_max, cid_f, jnp.float32(nc)),
                  axis=1, keepdims=True)                         # [nq, 1]
    y_ref[...] = idx.astype(jnp.int32)


def pred_proto(query, proto):
    nq, _ = query.shape
    return pl.pallas_call(
        _pred_proto_kernel,
        out_shape=jax.ShapeDtypeStruct((nq, 1), jnp.int32),
        in_specs=[_VMEM, _VMEM],
        out_specs=_VMEM,
    )(query.astype(jnp.float32), proto.astype(jnp.float32))


# ----------------------------------------------------------------------------
# Episode path: ContrastNet.loss() downstream of the encoder (test mode).
# ----------------------------------------------------------------------------
def episode_forward(z, l, *, n_class, n_support, n_query, super_tau=1.0):
    n0, d = z.shape
    ns, nq = n_class * n_support, n_class * n_query
    z_support, z_query = z[:ns], z[ns:ns + nq]
    z_support_proto = z_support.reshape(n_class, n_support, d).mean(axis=1)

    Mixup = mixup(z, l)                                        # Pallas kernel 1

    contrast_labels = jnp.repeat(jnp.arange(n_class, dtype=jnp.int32), n_support)
    final_loss = contrastive_loss(contrast_labels, (z_support, z_query),
                                  Mixup, tau=super_tau)        # Pallas kernel 2

    y_pred = pred_proto(z_query, z_support_proto)[:, 0]        # Pallas kernel 3
    acc = jnp.mean((y_pred == contrast_labels).astype(jnp.float32))
    return final_loss, acc


# TODO(synk): HuggingFace tokenizer + AutoModel soft-prompt encoder
# (ContrastNet.forward over strings) has no Pallas equivalent; embeddings `z`
# are synthesized deterministically instead.
# TODO(synk): train-mode auxiliary mixup_loss (entropy + CE over mixup
# prototypes) is not reproduced; final_loss in the reference is the
# contrastive loss, which is what is computed here.


if __name__ == "__main__":
    key = jax.random.PRNGKey(0)

    n_class, n_support, n_query = 5, 1, 1
    D = 128                                   # hidden dim (768 in real model)
    n_total = n_class * (n_support + n_query)  # rows of z = 10

    z = jax.random.normal(key, (n_total, D), dtype=jnp.float32)
    l = jnp.float32(0.6)                      # learnable mixing scalar `l`

    run = jax.jit(functools.partial(episode_forward, n_class=n_class,
                                    n_support=n_support, n_query=n_query,
                                    super_tau=1.0))
    final_loss, acc = jax.block_until_ready(run(z, l))

    assert jnp.isfinite(final_loss), "non-finite loss"
    print("KERNEL_OK")
</pallas_src>

<mosaic_0001>
module attributes {stable_mosaic.version = 11 : i64} {
  func.func @_mixup_kernel(%arg0: memref<5x128xf32, #tpu.memory_space<vmem>>, %arg1: memref<10x128xf32, #tpu.memory_space<vmem>>, %arg2: memref<1x1xf32, #tpu.memory_space<smem>>, %arg3: memref<5x128xf32, #tpu.memory_space<vmem>>) attributes {dimension_semantics = [], scalar_prefetch = 0 : i64, scratch_operands = 0 : i64, tpu.core_type = #tpu.core_type<tc>} {
    %c0 = arith.constant 0 : index
    %c0_0 = arith.constant 0 : index
    %0 = vector.load %arg0[%c0, %c0_0] : memref<5x128xf32, #tpu.memory_space<vmem>>, vector<5x128xf32>
    %c0_1 = arith.constant 0 : index
    %c0_2 = arith.constant 0 : index
    %1 = vector.load %arg1[%c0_1, %c0_2] : memref<10x128xf32, #tpu.memory_space<vmem>>, vector<10x128xf32>
    %c0_3 = arith.constant 0 : index
    %c0_4 = arith.constant 0 : index
    %2 = memref.load %arg2[%c0_3, %c0_4] : memref<1x1xf32, #tpu.memory_space<smem>>
    %cst = arith.constant dense<0.000000e+00> : vector<5x10xf32>
    %3 = tpu.matmul %0, %1, %cst {dimension_numbers = #tpu.dot_dimension_numbers<[1], [1], [0], [0], [0, 0, 1, 0], [], []>} : vector<5x128xf32>, vector<10x128xf32>, vector<5x10xf32> -> vector<5x10xf32>
    %4 = tpu.iota {dimensions = array<i32: 0>} : vector<5x10xi32>
    %5 = tpu.iota {dimensions = array<i32: 1>} : vector<5x10xi32>
    %6 = arith.cmpi eq, %4, %5 : vector<5x10xi32>
    %c5_i32 = arith.constant 5 : i32
    %7 = vector.broadcast %c5_i32 : i32 to vector<5x10xi32>
    %8 = arith.cmpi slt, %4, %7 : vector<5x10xi32>
    %9 = arith.andi %6, %8 : vector<5x10xi1>
    %c5_i32_5 = arith.constant 5 : i32
    %10 = vector.broadcast %c5_i32_5 : i32 to vector<5x10xi32>
    %11 = arith.cmpi sge, %5, %10 : vector<5x10xi32>
    %12 = arith.ori %9, %11 : vector<5x10xi1>
    %cst_6 = arith.constant -1.000000e+30 : f32
    %13 = vector.broadcast %cst_6 : f32 to vector<5x10xf32>
    %14 = arith.select %12, %13, %3 : vector<5x10xi1>, vector<5x10xf32>
    %cst_7 = arith.constant dense<0xFF800000> : vector<5xf32>
    %15 = vector.multi_reduction <maximumf>, %14, %cst_7 [1] : vector<5x10xf32> to vector<5xf32>
    %16 = vector.shape_cast %15 : vector<5xf32> to vector<5x1xf32>
    %17 = arith.sitofp %5 : vector<5x10xi32> to vector<5x10xf32>
    %18 = vector.broadcast %16 : vector<5x1xf32> to vector<5x10xf32>
    %19 = arith.cmpf oeq, %14, %18 : vector<5x10xf32>
    %cst_8 = arith.constant 1.000000e+01 : f32
    %20 = vector.broadcast %cst_8 : f32 to vector<5x10xf32>
    %21 = arith.select %19, %17, %20 : vector<5x10xi1>, vector<5x10xf32>
    %cst_9 = arith.constant dense<0x7F800000> : vector<5xf32>
    %22 = vector.multi_reduction <minimumf>, %21, %cst_9 [1] : vector<5x10xf32> to vector<5xf32>
    %23 = vector.shape_cast %22 : vector<5xf32> to vector<5x1xf32>
    %24 = vector.broadcast %23 : vector<5x1xf32> to vector<5x10xf32>
    %25 = arith.cmpf oeq, %17, %24 : vector<5x10xf32>
    %26 = arith.extui %25 : vector<5x10xi1> to vector<5x10xi32>
    %27 = arith.sitofp %26 : vector<5x10xi32> to vector<5x10xf32>
    %cst_10 = arith.constant dense<0.000000e+00> : vector<5x128xf32>
    %28 = tpu.matmul %27, %1, %cst_10 {dimension_numbers = #tpu.dot_dimension_numbers<[1], [0], [0], [1], [0, 0, 1, 1], [], []>} : vector<5x10xf32>, vector<10x128xf32>, vector<5x128xf32> -> vector<5x128xf32>
    %29 = vector.broadcast %2 : f32 to vector<5x128xf32>
    %30 = arith.mulf %29, %0 : vector<5x128xf32>
    %cst_11 = arith.constant 1.000000e+00 : f32
    %31 = arith.subf %cst_11, %2 : f32
    %32 = vector.broadcast %31 : f32 to vector<5x128xf32>
    %33 = arith.mulf %32, %28 : vector<5x128xf32>
    %34 = arith.addf %30, %33 : vector<5x128xf32>
    %c0_12 = arith.constant 0 : index
    %c0_13 = arith.constant 0 : index
    %35 = vector.load %arg3[%c0_12, %c0_13] : memref<5x128xf32, #tpu.memory_space<vmem>>, vector<5x128xf32>
    tpu.vector_store %arg3[%c0_12, %c0_13], %34 {strides = array<i32>} : memref<5x128xf32, #tpu.memory_space<vmem>>, vector<5x128xf32>,
    return
  }
}

module attributes {stable_mosaic.version = 11 : i64} {
  func.func @_pred_proto_kernel(%arg0: memref<5x128xf32, #tpu.memory_space<vmem>>, %arg1: memref<5x128xf32, #tpu.memory_space<vmem>>, %arg2: memref<5x1xi32, #tpu.memory_space<vmem>>) attributes {dimension_semantics = [], scalar_prefetch = 0 : i64, scratch_operands = 0 : i64, tpu.core_type = #tpu.core_type<tc>} {
    %c0 = arith.constant 0 : index
    %c0_0 = arith.constant 0 : index
    %0 = vector.load %arg0[%c0, %c0_0] : memref<5x128xf32, #tpu.memory_space<vmem>>, vector<5x128xf32>
    %c0_1 = arith.constant 0 : index
    %c0_2 = arith.constant 0 : index
    %1 = vector.load %arg1[%c0_1, %c0_2] : memref<5x128xf32, #tpu.memory_space<vmem>>, vector<5x128xf32>
    %cst = arith.constant dense<0.000000e+00> : vector<5x5xf32>
    %2 = tpu.matmul %0, %1, %cst {dimension_numbers = #tpu.dot_dimension_numbers<[1], [1], [0], [0], [0, 0, 1, 0], [], []>} : vector<5x128xf32>, vector<5x128xf32>, vector<5x5xf32> -> vector<5x5xf32>
    %3 = tpu.iota {dimensions = array<i32: 1>} : vector<5x5xi32>
    %4 = arith.sitofp %3 : vector<5x5xi32> to vector<5x5xf32>
    %cst_3 = arith.constant dense<0xFF800000> : vector<5xf32>
    %5 = vector.multi_reduction <maximumf>, %2, %cst_3 [1] : vector<5x5xf32> to vector<5xf32>
    %6 = vector.shape_cast %5 : vector<5xf32> to vector<5x1xf32>
    %7 = vector.broadcast %6 : vector<5x1xf32> to vector<5x5xf32>
    %8 = arith.cmpf oeq, %2, %7 : vector<5x5xf32>
    %cst_4 = arith.constant 5.000000e+00 : f32
    %9 = vector.broadcast %cst_4 : f32 to vector<5x5xf32>
    %10 = arith.select %8, %4, %9 : vector<5x5xi1>, vector<5x5xf32>
    %cst_5 = arith.constant dense<0x7F800000> : vector<5xf32>
    %11 = vector.multi_reduction <minimumf>, %10, %cst_5 [1] : vector<5x5xf32> to vector<5xf32>
    %12 = vector.shape_cast %11 : vector<5xf32> to vector<5x1xf32>
    %13 = arith.fptosi %12 : vector<5x1xf32> to vector<5x1xi32>
    %c0_6 = arith.constant 0 : index
    %c0_7 = arith.constant 0 : index
    %14 = vector.load %arg2[%c0_6, %c0_7] : memref<5x1xi32, #tpu.memory_space<vmem>>, vector<5x1xi32>
    tpu.vector_store %arg2[%c0_6, %c0_7], %13 {strides = array<i32>} : memref<5x1xi32, #tpu.memory_space<vmem>>, vector<5x1xi32>,
    return
  }
}

module attributes {stable_mosaic.version = 11 : i64} {
  func.func @_contrastive_loss_kernel(%arg0: memref<15x128xf32, #tpu.memory_space<vmem>>, %arg1: memref<15x1xi32, #tpu.memory_space<vmem>>, %arg2: memref<1x15xi32, #tpu.memory_space<vmem>>, %arg3: memref<1x1xf32, #tpu.memory_space<vmem>>) attributes {dimension_semantics = [], scalar_prefetch = 0 : i64, scratch_operands = 0 : i64, tpu.core_type = #tpu.core_type<tc>} {
    %c0 = arith.constant 0 : index
    %c0_0 = arith.constant 0 : index
    %0 = vector.load %arg0[%c0, %c0_0] : memref<15x128xf32, #tpu.memory_space<vmem>>, vector<15x128xf32>
    %cst = arith.constant dense<0.000000e+00> : vector<15x15xf32>
    %1 = tpu.matmul %0, %0, %cst {dimension_numbers = #tpu.dot_dimension_numbers<[1], [1], [0], [0], [0, 0, 1, 0], [], []>} : vector<15x128xf32>, vector<15x128xf32>, vector<15x15xf32> -> vector<15x15xf32>
    %cst_1 = arith.constant 1.000000e+00 : f32
    %2 = vector.broadcast %cst_1 : f32 to vector<15x15xf32>
    %3 = arith.mulf %1, %2 : vector<15x15xf32>
    %cst_2 = arith.constant dense<0xFF800000> : vector<15xf32>
    %4 = vector.multi_reduction <maximumf>, %3, %cst_2 [1] : vector<15x15xf32> to vector<15xf32>
    %5 = vector.shape_cast %4 : vector<15xf32> to vector<15x1xf32>
    %6 = vector.broadcast %5 : vector<15x1xf32> to vector<15x15xf32>
    %7 = arith.subf %3, %6 : vector<15x15xf32>
    %8 = math.exp %7 : vector<15x15xf32>
    %9 = tpu.iota {dimensions = array<i32: 0>} : vector<15x15xi32>
    %10 = tpu.iota {dimensions = array<i32: 1>} : vector<15x15xi32>
    %11 = arith.cmpi eq, %9, %10 : vector<15x15xi32>
    %cst_3 = arith.constant 0.000000e+00 : f32
    %cst_4 = arith.constant 1.000000e+00 : f32
    %12 = vector.broadcast %cst_3 : f32 to vector<15x15xf32>
    %13 = vector.broadcast %cst_4 : f32 to vector<15x15xf32>
    %14 = arith.select %11, %12, %13 : vector<15x15xi1>, vector<15x15xf32>
    %c0_5 = arith.constant 0 : index
    %c0_6 = arith.constant 0 : index
    %15 = vector.load %arg1[%c0_5, %c0_6] : memref<15x1xi32, #tpu.memory_space<vmem>>, vector<15x1xi32>
    %c0_7 = arith.constant 0 : index
    %c0_8 = arith.constant 0 : index
    %16 = vector.load %arg2[%c0_7, %c0_8] : memref<1x15xi32, #tpu.memory_space<vmem>>, vector<1x15xi32>
    %17 = vector.broadcast %15 : vector<15x1xi32> to vector<15x15xi32>
    %18 = vector.broadcast %16 : vector<1x15xi32> to vector<15x15xi32>
    %19 = arith.cmpi eq, %17, %18 : vector<15x15xi32>
    %cst_9 = arith.constant 1.000000e+00 : f32
    %cst_10 = arith.constant 0.000000e+00 : f32
    %20 = vector.broadcast %cst_9 : f32 to vector<15x15xf32>
    %21 = vector.broadcast %cst_10 : f32 to vector<15x15xf32>
    %22 = arith.select %19, %20, %21 : vector<15x15xi1>, vector<15x15xf32>
    %23 = arith.mulf %22, %14 : vector<15x15xf32>
    %24 = arith.mulf %8, %14 : vector<15x15xf32>
    %cst_11 = arith.constant dense<0.000000e+00> : vector<15xf32>
    %25 = vector.multi_reduction <add>, %24, %cst_11 [1] : vector<15x15xf32> to vector<15xf32>
    %26 = vector.shape_cast %25 : vector<15xf32> to vector<15x1xf32>
    %cst_12 = arith.constant 1.000000e-10 : f32
    %27 = vector.broadcast %cst_12 : f32 to vector<15x1xf32>
    %28 = arith.maximumf %26, %27 : vector<15x1xf32>
    %29 = arith.mulf %8, %23 : vector<15x15xf32>
    %cst_13 = arith.constant dense<0.000000e+00> : vector<15xf32>
    %30 = vector.multi_reduction <add>, %29, %cst_13 [1] : vector<15x15xf32> to vector<15xf32>
    %31 = vector.shape_cast %30 : vector<15xf32> to vector<15x1xf32>
    %cst_14 = arith.constant 1.000000e-10 : f32
    %32 = vector.broadcast %cst_14 : f32 to vector<15x1xf32>
    %33 = arith.maximumf %31, %32 : vector<15x1xf32>
    %34 = arith.divf %33, %28 : vector<15x1xf32>
    %35 = math.log %34 : vector<15x1xf32>
    %cst_15 = arith.constant 0.000000e+00 : f32
    %36 = vector.broadcast %cst_15 : f32 to vector<15x1xf32>
    %37 = arith.subf %36, %35 : vector<15x1xf32>
    %cst_16 = arith.constant dense<0.000000e+00> : vector<15xf32>
    %38 = vector.multi_reduction <add>, %23, %cst_16 [0] : vector<15x15xf32> to vector<15xf32>
    %39 = vector.shape_cast %38 : vector<15xf32> to vector<1x15xf32>
    %cst_17 = arith.constant 1.000000e+00 : f32
    %40 = vector.broadcast %cst_17 : f32 to vector<1x15xf32>
    %41 = arith.maximumf %39, %40 : vector<1x15xf32>
    %42 = vector.broadcast %37 : vector<15x1xf32> to vector<15x15xf32>
    %43 = arith.mulf %23, %42 : vector<15x15xf32>
    %44 = vector.broadcast %41 : vector<1x15xf32> to vector<15x15xf32>
    %45 = arith.divf %43, %44 : vector<15x15xf32>
    %cst_18 = arith.constant dense<0.000000e+00> : vector<15xf32>
    %46 = vector.multi_reduction <add>, %45, %cst_18 [1] : vector<15x15xf32> to vector<15xf32>
    %47 = vector.shape_cast %46 : vector<15xf32> to vector<15x1xf32>
    %cst_19 = arith.constant dense<0.000000e+00> : vector<1xf32>
    %48 = vector.multi_reduction <add>, %47, %cst_19 [0] : vector<15x1xf32> to vector<1xf32>
    %49 = vector.shape_cast %48 : vector<1xf32> to vector<1x1xf32>
    %cst_20 = arith.constant 0.0666666701 : f32
    %50 = vector.broadcast %cst_20 : f32 to vector<1x1xf32>
    %51 = arith.mulf %49, %50 : vector<1x1xf32>
    %c0_21 = arith.constant 0 : index
    %c0_22 = arith.constant 0 : index
    %52 = vector.load %arg3[%c0_21, %c0_22] : memref<1x1xf32, #tpu.memory_space<vmem>>, vector<1x1xf32>
    tpu.vector_store %arg3[%c0_21, %c0_22], %51 {strides = array<i32>} : memref<1x1xf32, #tpu.memory_space<vmem>>, vector<1x1xf32>,
    return
  }
}

</mosaic_0001>

<bundles_post_ra>
// kernel: episode_forward.4
= control target key start
LH: loop header
LB: loop body
LE: loop exit
PB: predicated region body
PF: predicated region fallthrough
CT: control target
= control target key end

     0   :  { %s308_s0 = inlined_call_operand.vmem [shape: f32[15,128], index: 0, kind: input, shape index: {}]   ;;  %s309_s1 = inlined_call_operand.vmem [shape: s32[15,1], index: 1, kind: input, shape index: {}]   ;;  %s310_s2 = inlined_call_operand.vmem [shape: s32[1,15], index: 2, kind: input, shape index: {}]   ;;  %s311_s3 = inlined_call_operand.hbm [shape: f32[1,1], index: 3, kind: output, shape index: {}]  }
   0x1   :  { %v16_v0 = vld [vmem:[%s308_s0 + $0x8] sm:$0x7f] }
   0x2   :  { %v64_v1 = vld [vmem:[%s309_s1 + $0x8] sm:$0x7f]  ;;  %197 = vmatpush.xpose.msra.mxu1 %v16_v0  ;;  %31 = vmatpush.xpose.msra.mxu0 %v16_v0 }
   0x3   :  { %8 = vsyncpa [#allocation3], 0  ;;  %v15_v2 = vld [vmem:[%s308_s0] sm:$0xff]  ;;  %v246_v3 = vmov 0   ;;  %vm44_vm0 = vcmask 120832   ;;  %vm40_vm1 = vcmask 121856   ;;  %v54_v9 = vlaneseq }
   0x4   :  { %203 = vset.pattern.permute.xlu1 %v246_v3  ;;  %204 = vset.pattern.permute.xlu0 %v246_v3  ;;  %v63_v4 = vld [vmem:[%s309_s1] sm:$0xff]  ;;  %v247_v18 = vmov 1.0   ;;  %v248_v20 = vmov 0.0   ;;  %s249_s1 = smov [#allocation2]   ;;  %s188_s23 = sshll.u32 %s311_s3, 4  ;;  %s189_s23 = int_to_ptr.hbm [resolvable:$true] %s188_s23 }
   0x5   :  { %70 = vperm.xlu1 %203, %v64_v1   ;;  %v55_v10 = vshrl.u32 %v54_v9, 7  ;;  %v205_v12 = vld [vmem:[%s310_s2] ss:$0 sm:$0xff]  ;;  %v58_v14 = vand.u32 127, %v54_v9  ;;  %s186_s2 = sshll.u32 %s249_s1, 4  ;;  %s187_s2 = int_to_ptr.vmem [resolvable:$true] %s186_s2 }
   0x6   :  { %198 = vmatpush.xpose.msra.mxu1 %v15_v2  ;;  %32 = vmatpush.xpose.msra.mxu0 %v15_v2 }
   0x7   :  { %v56_v13 = vadd.s32 8, %v55_v10  ;;  %vm59_vm4 = vcmp.eq.s32.totalorder %v55_v10, %v58_v14 }
   0x8   :  { %v61_v32 = vsel %vm59_vm4, 0.0, %v247_v18  ;;  %vm169_vm4 = vcmask 1046528  }
   0x9   :  { %36 = vmatmul.f32.vlgmr.msra.gmra.mxu1 %v16_v0  ;;  %33 = vmatmul.f32.vlgmr.msra.gmra.mxu0 %v15_v2  ;;  %vm60_vm2 = vcmp.eq.s32.totalorder %v56_v13, %v58_v14 }
   0xa   :  { %v62_v19 = vsel %vm60_vm2, 0.0, %v247_v18 }
   0xd   :  { %67 = vperm.xlu1 %203, %v63_v4  }
  0x77   :  { %v71_v11 = vpop.permute.xlu1 %70 }
  0x78   :  { %vm74_vm3 = vcmp.eq.s32.totalorder %v71_v11, %v205_v12 }
  0x79   :  { %v76_v21 = vsel %vm74_vm3, 1.0, %v248_v20 }
  0x7a   :  { %v287_v25 = vmul.f32 %v76_v21, %v62_v19 }
  0x7c   :  { %v136_v40 = vsel %vm44_vm0, %v287_v25, 0.0 }
  0x7f   :  { %v68_v23 = vpop.permute.xlu1 %67 }
  0x80   :  { %vm73_vm5 = vcmp.eq.s32.totalorder %v68_v23, %v205_v12 }
  0x81   :  { %v75_v33 = vsel %vm73_vm5, 1.0, %v248_v20 }
  0x82   :  { %v292_v34 = vmul.f32 %v75_v33, %v61_v32 }
  0x84   :  { %v135_v41 = vsel %vm40_vm1, %v292_v34, 0.0 }
  0x85   :  { %v137_v42 = vadd.f32 %v136_v40, %v135_v41 }
  0x86   :  { %v37_v5 = vpop.f32.mrf.mxu1  ;;  %v34_v7 = vpop.f32.mrf.mxu0 }
  0x87   :  { %v45_v6 = vsel %vm44_vm0, %v37_v5, -inf  ;;  %v41_v8 = vsel %vm40_vm1, %v34_v7, -inf  ;;  %v138_v43 = vrot.slane %v137_v42, 4 }
  0x88   :  { %46 = vmax.xlane.f32.xlu0 %v45_v6 }
  0x89   :  { %v139_v44 = vadd.f32 %v138_v43, %v137_v42 }
  0x8b   :  { %v140_v45 = vrot.slane %v139_v44, 2 }
  0x8d   :  { %v141_v46 = vadd.f32 %v140_v45, %v139_v44 }
  0x8f   :  { %v142_v47 = vrot.slane %v141_v46, 1 }
  0x90   :  { %42 = vmax.xlane.f32.xlu0 %v41_v8 }
  0x91   :  { %v143_v48 = vadd.f32 %v142_v47, %v141_v46 }
  0x93   :  { %v144_v51 = vmax.f32 %v143_v48, 1.0 }
  0x95   :  { %vm152_vm13 = vweird.f32 %v144_v51  ;;  %v156_v20 = vand.u32 2147483647, %v144_v51 }
  0x97   :  { %vm157_vm3 = vcmp.eq.f32.partialorder %v156_v20, 8.507059e+37 }
  0xfb   :  { %v47_v15 = vpop.xlane.xlu0 %46 }
  0xfc   :  { %v49_v16 = vsub.f32 %v37_v5, %v47_v15 }
  0xfe   :  { %v52_v17 = vmul.f32 1.442695, %v49_v16 }
 0x100   :  { %206 = vpow2.f32 %v52_v17  ;;  %v158_v17 = vand.u32 2147483648, %v144_v51 }
 0x103   :  { %v43_v22 = vpop.xlane.xlu0 %42 }
 0x104   :  { %v48_v24 = vsub.f32 %v34_v7, %v43_v22 }
 0x106   :  { %v207_v26 = vpop.eup %206  ;;  %v50_v27 = vmul.f32 1.442695, %v48_v24 }
 0x107   :  { %v80_v28 = vmul.f32 %v207_v26, %v62_v19  ;;  %v90_v29 = vmul.f32 %v207_v26, %v287_v25  ;;  %v159_v26 = vor.u32 1.1754944e-38, %v158_v17 }
 0x108   :  { %208 = vpow2.f32 %v50_v27 }
 0x109   :  { %v84_v30 = vsel %vm44_vm0, %v80_v28, 0.0  ;;  %v94_v31 = vsel %vm44_vm0, %v90_v29, 0.0 }
 0x10a   :  { %85 = vadd.xlane.f32.xlu2 %v84_v30  ;;  %95 = vadd.xlane.f32.xlu0 %v94_v31 }
 0x10e   :  { %v209_v35 = vpop.eup %208 }
 0x10f   :  { %v89_v36 = vmul.f32 %v209_v35, %v292_v34  ;;  %v79_v37 = vmul.f32 %v209_v35, %v61_v32 }
 0x111   :  { %v91_v38 = vsel %vm40_vm1, %v89_v36, 0.0  ;;  %v81_v39 = vsel %vm40_vm1, %v79_v37, 0.0 }
 0x112   :  { %92 = vadd.xlane.f32.xlu1 %v91_v38  ;;  %82 = vadd.xlane.f32.xlu2 %v81_v39 }
 0x17d   :  { %v86_v49 = vpop.xlane.xlu2 %85  ;;  %v96_v61 = vpop.xlane.xlu0 %95 }
 0x17e   :  { %v88_v50 = vmax.f32 %v86_v49, 1e-10  ;;  %v98_v3 = vmax.f32 %v96_v61, 1e-10 }
 0x180   :  { %210 = vrcp.f32 %v88_v50  ;;  %v125_v58 = vand.u32 2147483648, %v88_v50  ;;  %v123_v60 = vand.u32 2147483647, %v88_v50  ;;  %vm119_vm7 = vweird.f32 %v88_v50 }
 0x181   :  { %212 = vrcp.f32 %v144_v51 }
 0x182   :  { %v126_v1 = vor.u32 1.1754944e-38, %v125_v58  ;;  %vm124_vm9 = vcmp.eq.f32.partialorder %v123_v60, 8.507059e+37 }
 0x185   :  { %v83_v52 = vpop.xlane.xlu2 %82  ;;  %v93_v12 = vpop.xlane.xlu1 %92 }
 0x186   :  { %v211_v53 = vpop.eup %210  ;;  %v87_v54 = vmax.f32 %v83_v52, 1e-10  ;;  %v97_v16 = vmax.f32 %v93_v12, 1e-10 }
 0x187   :  { %v115_v55 = vmul.f32 %v211_v53, %v88_v50  ;;  %v213_v56 = vpop.eup %212  ;;  %vm120_vm6 = vweird.f32 %v211_v53 }
 0x188   :  { %214 = vrcp.f32 %v87_v54  ;;  %v148_v62 = vmul.f32 %v213_v56, %v144_v51  ;;  %vm121_vm8 = vmor %vm119_vm7, %vm120_vm6  ;;  %v110_v9 = vand.u32 2147483648, %v87_v54  ;;  %v108_v11 = vand.u32 2147483647, %v87_v54 }
 0x189   :  { %v116_v57 = vsub.f32 1.0, %v115_v55  ;;  %vm104_vm11 = vweird.f32 %v87_v54  ;;  %vm153_vm14 = vweird.f32 %v213_v56 }
 0x18a   :  { %v149_v6 = vsub.f32 1.0, %v148_v62  ;;  %v111_v15 = vor.u32 1.1754944e-38, %v110_v9  ;;  %vm109_vm15 = vcmp.eq.f32.partialorder %v108_v11, 8.507059e+37  ;;  %vm154_vm2 = vmor %vm152_vm13, %vm153_vm14 }
 0x18b   :  { %v117_v59 = vmul.f32 %v211_v53, %v116_v57 }
 0x18c   :  { %v150_v13 = vmul.f32 %v213_v56, %v149_v6 }
 0x18d   :  { %v118_v63 = vadd.f32 %v211_v53, %v117_v59 }
 0x18e   :  { %v215_v0 = vpop.eup %214  ;;  %v151_v19 = vadd.f32 %v213_v56, %v150_v13 }
 0x18f   :  { %v122_v2 = vsel %vm121_vm8, %v211_v53, %v118_v63  ;;  %v100_v4 = vmul.f32 %v215_v0, %v87_v54  ;;  %vm105_vm10 = vweird.f32 %v215_v0 }
 0x190   :  { %v127_v5 = vsel %vm124_vm9, %v126_v1, %v122_v2  ;;  %vm106_vm12 = vmor %vm104_vm11, %vm105_vm10  ;;  %v155_v28 = vsel %vm154_vm2, %v213_v56, %v151_v19 }
 0x191   :  { %v128_v7 = vmul.f32 %v127_v5, %v98_v3  ;;  %v101_v8 = vsub.f32 1.0, %v100_v4  ;;  %v160_v30 = vsel %vm157_vm3, %v159_v26, %v155_v28 }
 0x193   :  { %216 = vlog2.f32 %v128_v7  ;;  %v102_v10 = vmul.f32 %v215_v0, %v101_v8 }
 0x195   :  { %v103_v14 = vadd.f32 %v215_v0, %v102_v10 }
 0x197   :  { %v107_v18 = vsel %vm106_vm12, %v215_v0, %v103_v14 }
 0x198   :  { %v112_v21 = vsel %vm109_vm15, %v111_v15, %v107_v18 }
 0x199   :  { %v217_v22 = vpop.eup %216  ;;  %v113_v23 = vmul.f32 %v112_v21, %v97_v16 }
 0x19a   :  { %v132_v24 = vmul.f32 0.6931472, %v217_v22 }
 0x19b   :  { %218 = vlog2.f32 %v113_v23 }
 0x19c   :  { %v134_v27 = vsub.f32 0.0, %v132_v24 }
 0x19e   :  { %v146_v29 = vmul.f32 %v134_v27, %v287_v25 }
 0x1a0   :  { %v162_v31 = vmul.f32 %v160_v30, %v146_v29 }
 0x1a1   :  { %v219_v32 = vpop.eup %218 }
 0x1a2   :  { %v166_v33 = vsel %vm44_vm0, %v162_v31, 0.0  ;;  %v130_v35 = vmul.f32 0.6931472, %v219_v32  ;;  %vm179_vm0 = vcmask 0  }
 0x1a3   :  { %167 = vadd.xlane.f32.xlu2 %v166_v33 }
 0x1a4   :  { %v133_v36 = vsub.f32 0.0, %v130_v35 }
 0x1a6   :  { %v145_v37 = vmul.f32 %v133_v36, %v292_v34 }
 0x1a8   :  { %v161_v38 = vmul.f32 %v160_v30, %v145_v37 }
 0x1aa   :  { %v163_v39 = vsel %vm40_vm1, %v161_v38, 0.0 }
 0x1ab   :  { %164 = vadd.xlane.f32.xlu0 %v163_v39 }
 0x216   :  { %v168_v40 = vpop.xlane.xlu2 %167 }
 0x217   :  { %v170_v41 = vsel %vm169_vm4, %v168_v40, 0.0 }
 0x21e   :  { %v165_v42 = vpop.xlane.xlu0 %164 }
 0x21f   :  { %v171_v43 = vadd.f32 %v170_v41, %v165_v42 }
 0x221   :  { %v172_v25 = vrot.slane %v171_v43, 4 }
 0x223   :  { %v173_v44 = vadd.f32 %v172_v25, %v171_v43 }
 0x225   :  { %v174_v45 = vrot.slane %v173_v44, 2 }
 0x227   :  { %v175_v46 = vadd.f32 %v174_v45, %v173_v44 }
 0x229   :  { %v176_v47 = vrot.slane %v175_v46, 1 }
 0x22b   :  { %v177_v34 = vadd.f32 %v176_v47, %v175_v46 }
 0x22d   :  { %v178_v48 = vmul.f32 0.06666667, %v177_v34 }
 0x22f   :  { %180 = vst.msk [vmem:[#allocation2] sm:$0x1] %vm179_vm0, %v178_v48 }
 0x230   :  { %191 = dma.vmem_to_hbm [thread:$0]  %s187_s2, 16, %s189_s23, [#allocation3]  }
 0x231   :  { %244 = dma.done.wait [#allocation3], 16  }
 0x232   :  { %245 = vsyncadd [#allocation3], 4294967280 }
 0x233   :  { %196 = vsyncpa [#allocation3], 1 }

// kernel: episode_forward.3
= control target key start
LH: loop header
LB: loop body
LE: loop exit
PB: predicated region body
PF: predicated region fallthrough
CT: control target
= control target key end

     0   :  { %v39_v3 = vlaneseq  ;;  %vm49_vm5 = vcmask 77824   ;;  %vm66_vm6 = vcmask 1041408   ;;  %vm62_vm8 = vcmask 80896   ;;  %s144_s1 = inlined_call_operand.vmem [shape: f32[10,128], index: 1, kind: input, shape index: {}]   ;;  %s145_s0 = inlined_call_operand.vmem [shape: f32[5,128], index: 0, kind: input, shape index: {}]   ;;  %s146_s2 = inlined_call_operand.<no memory space> [shape: f32[1,1], index: 2, kind: input, shape index: {}]   ;;  %s147_s3 = inlined_call_operand.vmem [shape: f32[5,128], index: 3, kind: output, shape index: {}]  }
   0x1   :  { %v17_v0 = vld [vmem:[%s144_s1 + $0x8] sm:$0x3]  ;;  %v16_v1 = vld [vmem:[%s144_s1] sm:$0xff]  ;;  %v105_v14 = vmov 0.0   ;;  %s92_s18 = ssub.f32 1.0, %s146_s2  ;;  %v90_v16 = vstv %s146_s2 }
   0x2   :  { %33 = vmatpush.xpose.msra.mxu0 %v17_v0  ;;  %v15_v2 = vld [vmem:[%s145_s0] sm:$0x1f]  ;;  %v40_v4 = vshrl.u32 %v39_v3, 7  ;;  %v42_v5 = vand.u32 127, %v39_v3  ;;  %102 = vmatpush.msk.msra.mxu1 %vm66_vm6, %v17_v0 }
   0x3   :  { %v93_v17 = vstv %s92_s18  ;;  %v91_v18 = vmul.f32 %v90_v16, %v15_v2 }
   0x4   :  { %vm43_vm0 = vcmp.eq.s32.totalorder %v40_v4, %v42_v5  ;;  %vm44_vm1 = vcmp.lt.s32.totalorder %v40_v4, 5  ;;  %vm46_vm3 = vcmp.ge.s32.totalorder %v42_v5, 5  ;;  %85 = vmatpush.msra.mxu1 %v16_v1  ;;  %v53_v9 = vcvt.s32.f32 %v42_v5 }
   0x5   :  { %vm45_vm2 = vmand %vm43_vm0, %vm44_vm1 }
   0x6   :  { %34 = vmatpush.xpose.msra.mxu0 %v16_v1  ;;  %vm47_vm4 = vmor %vm45_vm2, %vm46_vm3 }
   0x9   :  { %35 = vmatmul.f32.vlgmr.msra.gmra.mxu0 %v15_v2 }
  0x86   :  { %v36_v6 = vpop.f32.mrf.mxu0 }
  0x87   :  { %v48_v7 = vsel %vm47_vm4, -1e+30, %v36_v6 }
  0x88   :  { %v50_v8 = vsel %vm49_vm5, %v48_v7, -inf }
  0x89   :  { %51 = vmax.xlane.f32.xlu0 %v50_v8 }
  0xfc   :  { %v52_v10 = vpop.xlane.xlu0 %51 }
  0xfd   :  { %vm54_vm7 = vcmp.eq.f32.partialorder %v48_v7, %v52_v10 }
  0xfe   :  { %v55_v11 = vsel %vm54_vm7, %v53_v9, 10.0 }
  0xff   :  { %v56_v12 = vsel %vm49_vm5, %v55_v11, inf }
 0x100   :  { %57 = vmin.xlane.f32.xlu0 %v56_v12 }
 0x173   :  { %v58_v13 = vpop.xlane.xlu0 %57 }
 0x174   :  { %vm59_vm9 = vcmp.eq.f32.partialorder %v53_v9, %v58_v13 }
 0x175   :  { %v101_v15 = vsel %vm59_vm9, 1.0, %v105_v14 }
 0x176   :  { %103 = vmatmul.msk.f32.vlgmr.msra.gmra.mxu1 %vm62_vm8, %v101_v15 }
 0x1f3   :  { %v87_v19 = vpop.f32.mrf.mxu1 }
 0x1f4   :  { %v94_v20 = vmul.f32 %v93_v17, %v87_v19 }
 0x1f6   :  { %v95_v21 = vadd.f32 %v94_v20, %v91_v18 }
 0x1f8   :  { %96 = vst [vmem:[%s147_s3] sm:$0x1f] %v95_v21 }

// kernel: episode_forward.5
= control target key start
LH: loop header
LB: loop body
LE: loop exit
PB: predicated region body
PF: predicated region fallthrough
CT: control target
= control target key end

     0   :  { %vm36_vm0 = vcmask 36864   ;;  %v33_v4 = vlaneseq  ;;  %vm46_vm3 = vcmask 4096   ;;  %s81_s1 = inlined_call_operand.vmem [shape: f32[5,128], index: 1, kind: input, shape index: {}]   ;;  %s82_s0 = inlined_call_operand.vmem [shape: f32[5,128], index: 0, kind: input, shape index: {}]   ;;  %s83_s2 = inlined_call_operand.vmem [shape: s32[5,1], index: 2, kind: output, shape index: {}]  }
   0x1   :  { %v12_v0 = vld [vmem:[%s81_s1] sm:$0x1f] }
   0x2   :  { %28 = vmatpush.xpose.msra.mxu0 %v12_v0  ;;  %v11_v1 = vld [vmem:[%s82_s0] sm:$0x1f]  ;;  %v34_v5 = vand.u32 127, %v33_v4 }
   0x4   :  { %v35_v6 = vcvt.s32.f32 %v34_v5 }
   0x5   :  { %29 = vmatmul.f32.vlgmr.msra.gmra.mxu0 %v11_v1 }
  0x82   :  { %v30_v2 = vpop.f32.mrf.mxu0 }
  0x83   :  { %v37_v3 = vsel %vm36_vm0, %v30_v2, -inf }
  0x84   :  { %38 = vmax.xlane.f32.xlu0 %v37_v3 }
  0xf7   :  { %v39_v7 = vpop.xlane.xlu0 %38 }
  0xf8   :  { %vm40_vm1 = vcmp.eq.f32.partialorder %v30_v2, %v39_v7 }
  0xf9   :  { %v41_v8 = vsel %vm40_vm1, %v35_v6, 5.0 }
  0xfa   :  { %v42_v9 = vsel %vm36_vm0, %v41_v8, inf }
  0xfb   :  { %43 = vmin.xlane.f32.xlu0 %v42_v9 }
 0x16e   :  { %v44_v10 = vpop.xlane.xlu0 %43 }
 0x16f   :  { %vm52_vm2 = vcmp.lt.s32.totalorder %v44_v10, 0  ;;  %v53_v11 = vceil.f32 %v44_v10  ;;  %v54_v12 = vfloor.f32 %v44_v10 }
 0x171   :  { %v55_v13 = vsel %vm52_vm2, %v53_v11, %v54_v12 }
 0x172   :  { %v56_v14 = vcvt.f32.s32 %v55_v13 }
 0x174   :  { %47 = vst.msk [vmem:[%s83_s2] sm:$0x1f] %vm46_vm3, %v56_v14 }

</bundles_post_ra>
